<compile_context>
chip_gen: v6e
topology: v6e:2x2x1
jax: 0.10.0
libtpu: 0.0.40
codegen_flags: <defaults>
</compile_context>

<pallas_src>
import jax
import jax.numpy as jnp
import numpy as np
from jax import lax
from jax.experimental import pallas as pl
from jax.experimental.pallas import tpu as pltpu

A_DIM = 6
S_DIM = (6, 8)               # state layout: 6 channels x 8-step history
HID = 128
CAT = 6 * HID                # 768
K_IN = S_DIM[0] * S_DIM[1]   # 48
OUT_PAD = 128                # lane-dense padded output width


def actor_kernel(x_ref, wbig_ref, bcat_ref, w6_ref, b6_ref, w7_ref, b7_ref, out_ref):
    # x: (1, 48) f32; weights bf16; biases f32; all accumulation in f32.
    x_bf = x_ref[...].astype(jnp.bfloat16)

    # Stage 1: all six branch linears as ONE block-diagonal matmul.
    pre = jnp.dot(x_bf, wbig_ref[...],
                  preferred_element_type=jnp.float32) + bcat_ref[...]        # (1, 768)
    # ReLU on branches 0..4 (lanes 0..639); branch 5 (lanes 640..767) passes through.
    lane = lax.broadcasted_iota(jnp.int32, pre.shape, 1)
    cat = jnp.where(lane < 5 * HID, jnp.maximum(pre, 0.0), pre)

    # Stage 2: linear6 as a single K=768 dot + ReLU.
    h6 = jnp.dot(cat.astype(jnp.bfloat16), w6_ref[...],
                 preferred_element_type=jnp.float32) + b6_ref[...]           # (1, 128)
    h6 = jnp.maximum(h6, 0.0)

    # Stage 3: linear7 padded to 128 output lanes -> unmasked full-lane store.
    out = jnp.dot(h6.astype(jnp.bfloat16), w7_ref[...],
                  preferred_element_type=jnp.float32) + b7_ref[...]          # (1, 128)
    out_ref[...] = out.astype(out_ref.dtype)


def init_params(key):
    """PyTorch-style default init: U(-1/sqrt(fan_in), 1/sqrt(fan_in)).
    Weights stored as (in_features, out_features); biases as (1, out_features)."""
    dims = [(1, HID), (1, HID), (8, HID), (8, HID), (6, HID), (1, HID),
            (CAT, HID), (HID, A_DIM)]
    params = []
    for (fin, fout) in dims:
        key, kw, kb = jax.random.split(key, 3)
        bound = 1.0 / np.sqrt(fin)
        w = jax.random.uniform(kw, (fin, fout), jnp.float32, -bound, bound)
        b = jax.random.uniform(kb, (1, fout), jnp.float32, -bound, bound)
        params.append((w, b))
    return params


def pack_params(params, weight_dtype=jnp.bfloat16):
    """One-time packing: block-diagonal branch weight, fused branch bias,
    lane-dense padded head. Weight matrices cast to bf16; biases stay f32."""
    (w0, b0), (w1, b1), (w2, b2), (w3, b3), (w4, b4), (w5, b5), (w6, b6), (w7, b7) = params

    wbig = jnp.zeros((K_IN, CAT), jnp.float32)
    wbig = wbig.at[7, 0 * HID:1 * HID].set(w0[0])        # branch 0: x[0, 7]
    wbig = wbig.at[15, 1 * HID:2 * HID].set(w1[0])       # branch 1: x[1, 7]
    wbig = wbig.at[16:24, 2 * HID:3 * HID].set(w2)       # branch 2: x[2, 0:8]
    wbig = wbig.at[24:32, 3 * HID:4 * HID].set(w3)       # branch 3: x[3, 0:8]
    wbig = wbig.at[32:38, 4 * HID:5 * HID].set(w4)       # branch 4: x[4, 0:6]
    wbig = wbig.at[47, 5 * HID:6 * HID].set(w5[0])       # branch 5: x[5, 7]
    bcat = jnp.concatenate([b0, b1, b2, b3, b4, b5], axis=1)          # (1, 768)

    w7p = jnp.zeros((HID, OUT_PAD), jnp.float32).at[:, :A_DIM].set(w7)  # (128, 128)
    b7p = jnp.zeros((1, OUT_PAD), jnp.float32).at[:, :A_DIM].set(b7)    # (1, 128)

    return dict(
        wbig=wbig.astype(weight_dtype),
        bcat=bcat,
        w6=w6.astype(weight_dtype),
        b6=b6,
        w7p=w7p.astype(weight_dtype),
        b7p=b7p,
    )


def actor_forward_pallas(x, packed):
    # glue: mimic x.view([s_dim[0], s_dim[1]]) then flatten to a (1, 48) row vector.
    x_flat = x.reshape(S_DIM).astype(jnp.float32).reshape(1, K_IN)
    vmem = pl.BlockSpec(memory_space=pltpu.MemorySpace.VMEM)
    out = pl.pallas_call(
        actor_kernel,
        out_shape=jax.ShapeDtypeStruct((1, OUT_PAD), jnp.float32),
        in_specs=[vmem] * 7,
        out_specs=vmem,
    )(x_flat, packed["wbig"], packed["bcat"], packed["w6"], packed["b6"],
      packed["w7p"], packed["b7p"])
    return out[:, :A_DIM]


def actor_forward_ref(x, params):
    """Pure-JAX reference mirroring the PyTorch forward.  Matmul operands are cast to
    bf16 (f32 accumulation) exactly like the kernel, so the comparison is apples-to-apples
    at the kernel's chosen numerics."""
    x2d = x.reshape(S_DIM).astype(jnp.float32)
    relu = lambda v: jnp.maximum(v, 0.0)

    def mm(a, w):
        return jnp.dot(a.astype(jnp.bfloat16), w.astype(jnp.bfloat16),
                       preferred_element_type=jnp.float32)

    (w0, b0), (w1, b1), (w2, b2), (w3, b3), (w4, b4), (w5, b5), (w6, b6), (w7, b7) = params
    h0 = relu(mm(x2d[0:1, 7:8], w0) + b0)
    h1 = relu(mm(x2d[1:2, 7:8], w1) + b1)
    h2 = relu(mm(x2d[2:3, :], w2) + b2)
    h3 = relu(mm(x2d[3:4, :], w3) + b3)
    h4 = relu(mm(x2d[4:5, 0:6], w4) + b4)
    h5 = mm(x2d[5:6, 7:8], w5) + b5            # no ReLU (matches the PyTorch code)
    cat = jnp.concatenate([h0, h1, h2, h3, h4, h5], axis=1)
    h6 = relu(mm(cat, w6) + b6)
    return mm(h6, w7) + b7


if __name__ == "__main__":
    key = jax.random.PRNGKey(0)
    key, kx = jax.random.split(key)
    x = jax.random.normal(kx, S_DIM, jnp.float32)      # state: (6, 8)
    params = init_params(key)
    packed = pack_params(params)                       # one-time packing (not per call)

    out = actor_forward_pallas(x, packed)
    out = jax.block_until_ready(out)

    ref = jax.block_until_ready(actor_forward_ref(x, params))
    assert out.shape == (1, A_DIM)
    np.testing.assert_allclose(np.asarray(out), np.asarray(ref), rtol=1e-3, atol=1e-3)

    print("KERNEL_OK")
</pallas_src>

<mosaic_0001>
module attributes {stable_mosaic.version = 11 : i64} {
  func.func @actor_kernel(%arg0: memref<1x48xf32, #tpu.memory_space<vmem>>, %arg1: memref<48x768xbf16, #tpu.memory_space<vmem>>, %arg2: memref<1x768xf32, #tpu.memory_space<vmem>>, %arg3: memref<768x128xbf16, #tpu.memory_space<vmem>>, %arg4: memref<1x128xf32, #tpu.memory_space<vmem>>, %arg5: memref<128x128xbf16, #tpu.memory_space<vmem>>, %arg6: memref<1x128xf32, #tpu.memory_space<vmem>>, %arg7: memref<1x128xf32, #tpu.memory_space<vmem>>) attributes {dimension_semantics = [], scalar_prefetch = 0 : i64, scratch_operands = 0 : i64, tpu.core_type = #tpu.core_type<tc>} {
    %c0 = arith.constant 0 : index
    %c0_0 = arith.constant 0 : index
    %0 = vector.load %arg0[%c0, %c0_0] : memref<1x48xf32, #tpu.memory_space<vmem>>, vector<1x48xf32>
    %1 = arith.truncf %0 : vector<1x48xf32> to vector<1x48xbf16>
    %c0_1 = arith.constant 0 : index
    %c0_2 = arith.constant 0 : index
    %2 = vector.load %arg1[%c0_1, %c0_2] : memref<48x768xbf16, #tpu.memory_space<vmem>>, vector<48x768xbf16>
    %cst = arith.constant dense<0.000000e+00> : vector<1x768xf32>
    %3 = tpu.matmul %1, %2, %cst {dimension_numbers = #tpu.dot_dimension_numbers<[1], [0], [0], [1], [0, 0, 1, 1], [], []>} : vector<1x48xbf16>, vector<48x768xbf16>, vector<1x768xf32> -> vector<1x768xf32>
    %c0_3 = arith.constant 0 : index
    %c0_4 = arith.constant 0 : index
    %4 = vector.load %arg2[%c0_3, %c0_4] : memref<1x768xf32, #tpu.memory_space<vmem>>, vector<1x768xf32>
    %5 = arith.addf %3, %4 : vector<1x768xf32>
    %6 = tpu.iota {dimensions = array<i32: 1>} : vector<1x768xi32>
    %c640_i32 = arith.constant 640 : i32
    %7 = vector.broadcast %c640_i32 : i32 to vector<1x768xi32>
    %8 = arith.cmpi slt, %6, %7 : vector<1x768xi32>
    %cst_5 = arith.constant 0.000000e+00 : f32
    %9 = vector.broadcast %cst_5 : f32 to vector<1x768xf32>
    %10 = arith.maximumf %5, %9 : vector<1x768xf32>
    %11 = arith.select %8, %10, %5 : vector<1x768xi1>, vector<1x768xf32>
    %12 = arith.truncf %11 : vector<1x768xf32> to vector<1x768xbf16>
    %c0_6 = arith.constant 0 : index
    %c0_7 = arith.constant 0 : index
    %13 = vector.load %arg3[%c0_6, %c0_7] : memref<768x128xbf16, #tpu.memory_space<vmem>>, vector<768x128xbf16>
    %cst_8 = arith.constant dense<0.000000e+00> : vector<1x128xf32>
    %14 = tpu.matmul %12, %13, %cst_8 {dimension_numbers = #tpu.dot_dimension_numbers<[1], [0], [0], [1], [0, 0, 1, 1], [], []>} : vector<1x768xbf16>, vector<768x128xbf16>, vector<1x128xf32> -> vector<1x128xf32>
    %c0_9 = arith.constant 0 : index
    %c0_10 = arith.constant 0 : index
    %15 = vector.load %arg4[%c0_9, %c0_10] : memref<1x128xf32, #tpu.memory_space<vmem>>, vector<1x128xf32>
    %16 = arith.addf %14, %15 : vector<1x128xf32>
    %cst_11 = arith.constant 0.000000e+00 : f32
    %17 = vector.broadcast %cst_11 : f32 to vector<1x128xf32>
    %18 = arith.maximumf %16, %17 : vector<1x128xf32>
    %19 = arith.truncf %18 : vector<1x128xf32> to vector<1x128xbf16>
    %c0_12 = arith.constant 0 : index
    %c0_13 = arith.constant 0 : index
    %20 = vector.load %arg5[%c0_12, %c0_13] : memref<128x128xbf16, #tpu.memory_space<vmem>>, vector<128x128xbf16>
    %cst_14 = arith.constant dense<0.000000e+00> : vector<1x128xf32>
    %21 = tpu.matmul %19, %20, %cst_14 {dimension_numbers = #tpu.dot_dimension_numbers<[1], [0], [0], [1], [0, 0, 1, 1], [], []>} : vector<1x128xbf16>, vector<128x128xbf16>, vector<1x128xf32> -> vector<1x128xf32>
    %c0_15 = arith.constant 0 : index
    %c0_16 = arith.constant 0 : index
    %22 = vector.load %arg6[%c0_15, %c0_16] : memref<1x128xf32, #tpu.memory_space<vmem>>, vector<1x128xf32>
    %23 = arith.addf %21, %22 : vector<1x128xf32>
    %c0_17 = arith.constant 0 : index
    %c0_18 = arith.constant 0 : index
    %24 = vector.load %arg7[%c0_17, %c0_18] : memref<1x128xf32, #tpu.memory_space<vmem>>, vector<1x128xf32>
    tpu.vector_store %arg7[%c0_17, %c0_18], %23 {strides = array<i32>} : memref<1x128xf32, #tpu.memory_space<vmem>>, vector<1x128xf32>,
    return
  }
}

</mosaic_0001>

<bundles_post_ra>
// kernel: tpu_custom_call.1
= control target key start
LH: loop header
LB: loop body
LE: loop exit
PB: predicated region body
PF: predicated region fallthrough
CT: control target
= control target key end

     0   :  { %12 = vsyncpa [#allocation3], 0  ;;  %s1512_s0 = inlined_call_operand.hbm [shape: f32[1,48], index: 0, kind: input, shape index: {}]   ;;  %s1513_s1 = inlined_call_operand.hbm [shape: bf16[48,768], index: 1, kind: input, shape index: {}]   ;;  %s1514_s2 = inlined_call_operand.hbm [shape: f32[1,768], index: 2, kind: input, shape index: {}]   ;;  %s1515_s3 = inlined_call_operand.hbm [shape: bf16[768,128], index: 3, kind: input, shape index: {}]   ;;  %s1516_s4 = inlined_call_operand.vmem [shape: f32[1,128], index: 4, kind: input, shape index: {}]   ;;  %s1517_s5 = inlined_call_operand.hbm [shape: bf16[128,128], index: 5, kind: input, shape index: {}]   ;;  %s1518_s6 = inlined_call_operand.vmem [shape: f32[1,128], index: 6, kind: input, shape index: {}]   ;;  %s1519_s7 = inlined_call_operand.hbm [shape: f32[1,128], index: 7, kind: output, shape index: {}]  }
   0x1   :  { %13 = vsyncpa [#allocation6], 0 }
   0x2   :  { %14 = vsyncpa [#allocation9], 0 }
   0x3   :  { %15 = vsyncpa [#allocation4], 0  ;;  %s1418_s24 = smov [#allocation5]  }
   0x4   :  { %s31_s25 = sshll.u32 %s1418_s24, 4  ;;  %s32_s25 = int_to_ptr.vmem [resolvable:$true] %s31_s25 }
   0x5   :  { %s1298_s26 = scalar_lea.vmem %s32_s25, 2304  ;;  %p1303_p1 = scmp.lt.s32.totalorder %s32_s25, %s32_s25 }
   0x6   :  { %p1299_p0 = scmp.ne.s32.totalorder %s32_s25, %s1298_s26  ;;  %p1304_p2 = scmp.lt.s32.totalorder %s1298_s26, %s1298_s26 }
   0x8   :  { %p1305_p3 = por %p1304_p2, %p1303_p1 }
   0xa   :  { %p1306_p4 = pnand %p1305_p3, %p1299_p0 }
   0xc   :  { %1309 = shalt.err (!%p1306_p4)
}
   0xd   :  { %s1419_s27 = smov 384   ;;  %s1420_s28 = smov 24  }
   0xe   :  { %37 = dma.hbm_to_vmem [thread:$0]  %s1513_s1, 2304, %s32_s25, [#allocation6], %s1419_s27, %s1419_s27, %s1420_s28  }
   0xf   :  { %s1421_s8 = smov [#allocation8]  }
  0x10   :  { %s53_s9 = sshll.u32 %s1421_s8, 4  ;;  %s54_s9 = int_to_ptr.vmem [resolvable:$true] %s53_s9 }
  0x11   :  { %s1318_s10 = scalar_lea.vmem %s54_s9, 6144  ;;  %p1323_p6 = scmp.lt.s32.totalorder %s54_s9, %s54_s9 }
  0x12   :  { %p1319_p5 = scmp.ne.s32.totalorder %s54_s9, %s1318_s10  ;;  %p1324_p7 = scmp.lt.s32.totalorder %s1318_s10, %s1318_s10 }
  0x14   :  { %p1325_p8 = por %p1324_p7, %p1323_p6 }
  0x16   :  { %p1326_p9 = pnand %p1325_p8, %p1319_p5 }
  0x18   :  { %1329 = shalt.err (!%p1326_p9)
}
  0x19   :  { %s1422_s11 = smov 64   ;;  %s1423_s12 = smov 4  }
  0x1a   :  { %59 = dma.hbm_to_vmem [thread:$0]  %s1515_s3, 6144, %s54_s9, [#allocation9], %s1422_s11, %s1422_s11, %s1423_s12  }
  0x1b   :  { %s1424_s1 = smov [#allocation2]   ;;  %s1425_s16 = smov [#allocation7]  }
  0x1c   :  { %s22_s15 = sshll.u32 %s1424_s1, 4  ;;  %s44_s17 = sshll.u32 %s1425_s16, 4  ;;  %s23_s15 = int_to_ptr.vmem [resolvable:$true] %s22_s15  ;;  %s45_s17 = int_to_ptr.vmem [resolvable:$true] %s44_s17 }
  0x1d   :  { %s1338_s18 = scalar_lea.vmem %s23_s15, 16  ;;  %s1342_s19 = scalar_lea.vmem %s23_s15, 32 }
  0x1e   :  { %p1339_p10 = scmp.ne.s32.totalorder %s23_s15, %s1338_s18  ;;  %p1343_p11 = scmp.lt.s32.totalorder %s23_s15, %s23_s15 }
  0x1f   :  { %p1344_p12 = scmp.lt.s32.totalorder %s1342_s19, %s1338_s18 }
  0x21   :  { %p1345_p13 = por %p1344_p12, %p1343_p11 }
  0x23   :  { %p1346_p0 = pnand %p1345_p13, %p1339_p10 }
  0x25   :  { %1349 = shalt.err (!%p1346_p0)
}
  0x26   :  { %25 = dma.hbm_to_vmem [thread:$0]  %s1512_s0, 16, %s23_s15, [#allocation3]  }
  0x27   :  { %s1358_s22 = scalar_lea.vmem %s45_s17, 96  ;;  %p1363_p2 = scmp.lt.s32.totalorder %s45_s17, %s45_s17 }
  0x28   :  { %p1359_p1 = scmp.ne.s32.totalorder %s45_s17, %s1358_s22  ;;  %p1364_p3 = scmp.lt.s32.totalorder %s1358_s22, %s1358_s22 }
  0x2a   :  { %p1365_p4 = por %p1364_p3, %p1363_p2 }
  0x2c   :  { %p1366_p5 = pnand %p1365_p4, %p1359_p1 }
  0x2e   :  { %1369 = shalt.err (!%p1366_p5)
}
  0x2f   :  { %47 = dma.hbm_to_vmem [thread:$0]  %s1514_s2, 96, %s45_s17, [#allocation6]  }
  0x30   :  { %s1426_s24 = smov [#allocation10]  }
  0x31   :  { %s67_s25 = sshll.u32 %s1426_s24, 4  ;;  %s68_s25 = int_to_ptr.vmem [resolvable:$true] %s67_s25 }
  0x32   :  { %s1378_s26 = scalar_lea.vmem %s68_s25, 1024  ;;  %p1383_p7 = scmp.lt.s32.totalorder %s68_s25, %s68_s25 }
  0x33   :  { %p1379_p6 = scmp.ne.s32.totalorder %s68_s25, %s1378_s26  ;;  %p1384_p8 = scmp.lt.s32.totalorder %s1378_s26, %s1378_s26 }
  0x35   :  { %p1385_p9 = por %p1384_p8, %p1383_p7 }
  0x37   :  { %p1386_p10 = pnand %p1385_p9, %p1379_p6 }
  0x39   :  { %1389 = shalt.err (!%p1386_p10)
}
  0x3a   :  { %73 = dma.hbm_to_vmem [thread:$0]  %s1517_s5, 1024, %s68_s25, [#allocation9], %s1422_s11, %s1422_s11, %s1423_s12  }
  0x3b   :  { %1410 = dma.done.wait [#allocation3], 16  }
  0x3c   :  { %1411 = vsyncadd [#allocation3], 4294967280 }
  0x3d   :  { %1412 = dma.done.wait [#allocation6], 2400  }
  0x3e   :  { %1413 = vsyncadd [#allocation6], 4294964896 }
  0x3f   :  { %1414 = dma.done.wait [#allocation9], 7168  }
  0x40   :  { %1415 = vsyncadd [#allocation9], 4294960128  ;;  %v1427_v0 = vmov 0   ;;  %v1207_v1 = vld [vmem:[#allocation5 + $0x64] ss:$24 sps:$4 sm:$0xff]   ;;  %vm234_vm0 = vcmask 392192   ;;  %v204_v54 = vlaneseq }
  0x41   :  { %270 = vmatprep.mubr.bf16.mxu0 %v1427_v0  ;;  %311 = vmatprep.mubr.bf16.mxu1 %v1427_v0  ;;  %v1209_v2 = vld [vmem:[#allocation5 + $0x60] ss:$24 sps:$4 sm:$0xff]   ;;  %v1210_v3 = vld [vmem:[#allocation5 + $0x6c] ss:$24 sps:$4 sm:$0xff]   ;;  %v1215_v6 = vld [vmem:[#allocation5 + $0x30] ss:$24 sps:$4 sm:$0xff]  }
  0x42   :  { %248 = vmatprep.subr.bf16.mxu0 %v1207_v1  ;;  %v1212_v4 = vld [vmem:[#allocation5 + $0x68] ss:$24 sps:$4 sm:$0xff]   ;;  %v1213_v5 = vld [vmem:[#allocation5 + $0x34] ss:$24 sps:$4 sm:$0xff]   ;;  %289 = vmatprep.subr.bf16.mxu1 %v1210_v3  ;;  %v1218_v8 = vld [vmem:[#allocation5 + $0x38] ss:$24 sps:$4 sm:$0xff]  }
  0x43   :  { %249 = vmatpush1.bf16.msra.mxu0 %v1209_v2  ;;  %v1216_v7 = vld [vmem:[#allocation5 + $0x3c] ss:$24 sps:$4 sm:$0xff]   ;;  %290 = vmatpush1.bf16.msra.mxu1 %v1212_v4  ;;  %v1221_v10 = vld [vmem:[#allocation5] ss:$24 sps:$4 sm:$0xff]   ;;  %v1222_v11 = vld [vmem:[#allocation5 + $0xc] ss:$24 sps:$4 sm:$0xff]  }
  0x44   :  { %250 = vmatprep.subr.bf16.mxu0 %v1213_v5  ;;  %291 = vmatprep.subr.bf16.mxu1 %v1216_v7  ;;  %v1219_v9 = vld [vmem:[#allocation5 + $0x4] ss:$24 sps:$4 sm:$0xff]   ;;  %v1224_v13 = vld [vmem:[#allocation5 + $0x8] ss:$24 sps:$4 sm:$0xff]   ;;  %v1227_v14 = vld [vmem:[#allocation5 + $0x74] ss:$24 sps:$4 sm:$0xff]  }
  0x45   :  { %v92_v12 = vld [vmem:[#allocation2] sm:$0x1]  ;;  %v1225_v16 = vld [vmem:[#allocation5 + $0x70] ss:$24 sps:$4 sm:$0xff]   ;;  %v1228_v18 = vld [vmem:[#allocation5 + $0x40] ss:$24 sps:$4 sm:$0xff]  }
  0x46   :  { %v93_v15 = vpack.c.bf16 %v92_v12, %v92_v12  ;;  %v1230_v17 = vld [vmem:[#allocation5 + $0x44] ss:$24 sps:$4 sm:$0xff]   ;;  %v1234_v19 = vld [vmem:[#allocation8 + $0x78] sm:$0xff]   ;;  %v1495_v55 = vshrl.u32 %v204_v54, 7  ;;  %vm1429_vm1 = vmmov 0   ;;  %s1430_s30 = smov [#allocation11]  }
  0x47   :  { %251 = vmatpush1.bf16.msra.mxu0 %v1215_v6  ;;  %292 = vmatpush1.bf16.msra.mxu1 %v1218_v8  ;;  %v1235_v20 = vld [vmem:[#allocation8 + $0x38] sm:$0xff]   ;;  %v1237_v22 = vld [vmem:[#allocation8 + $0x70] sm:$0xff]   ;;  %v1241_v26 = vld [vmem:[#allocation8 + $0x68] sm:$0xff]   ;;  %s1011_s8 = sshll.u32 %s1430_s30, 4  ;;  %s1012_s8 = int_to_ptr.vmem [resolvable:$true] %s1011_s8 }
  0x48   :  { %252 = vmatprep.subr.bf16.mxu0 %v1219_v9  ;;  %293 = vmatprep.subr.bf16.mxu1 %v1222_v11  ;;  %v1233_v21 = vld [vmem:[#allocation5 + $0x14] ss:$24 sps:$4 sm:$0xff]   ;;  %v1231_v23 = vld [vmem:[#allocation5 + $0x10] ss:$24 sps:$4 sm:$0xff]   ;;  %v1243_v28 = vld [vmem:[#allocation8 + $0x28] sm:$0xff]   ;;  %v206_v56 = vsub.s32 0, %v1495_v55  ;;  %p1395_p12 = scmp.lt.s32.totalorder %s1012_s8, %s1012_s8 }
  0x49   :  { %v1239_v24 = vld [vmem:[#allocation8 + $0x30] sm:$0xff]   ;;  %v1236_v25 = vld [vmem:[#allocation8 + $0xf8] sm:$0xff]   ;;  %v1245_v30 = vld [vmem:[#allocation8 + $0x60] sm:$0xff]   ;;  %v210_v58 = vsub.s32 1, %v1495_v55  ;;  %v214_v59 = vsub.s32 2, %v1495_v55  ;;  %v218_v61 = vsub.s32 3, %v1495_v55 }
  0x4a   :  { %v1238_v27 = vld [vmem:[#allocation8 + $0xb8] sm:$0xff]   ;;  %v1240_v29 = vld [vmem:[#allocation8 + $0xf0] sm:$0xff]   ;;  %v1247_v32 = vld [vmem:[#allocation8 + $0x20] sm:$0xff]   ;;  %s1394_s9 = scalar_lea.vmem %s1012_s8, 32 }
  0x4b   :  { %253 = vmatpush1.bf16.msra.mxu0 %v1221_v10  ;;  %294 = vmatpush1.bf16.msra.mxu1 %v1224_v13  ;;  %v1242_v31 = vld [vmem:[#allocation8 + $0xb0] sm:$0xff]   ;;  %v1244_v33 = vld [vmem:[#allocation8 + $0xe8] sm:$0xff]   ;;  %v1249_v34 = vld [vmem:[#allocation8 + $0x58] sm:$0xff]  }
  0x4c   :  { %330 = vmatprep.subr.bf16.mxu0 %v1227_v14  ;;  %1099 = vmatprep.subr.bf16.mxu1 %v1234_v19  ;;  %v1246_v35 = vld [vmem:[#allocation8 + $0xa8] sm:$0xff]   ;;  %v1251_v36 = vld [vmem:[#allocation8 + $0x18] sm:$0xff]   ;;  %v1248_v37 = vld [vmem:[#allocation8 + $0xe0] sm:$0xff]  }
  0x4d   :  { %v1253_v38 = vld [vmem:[#allocation8 + $0x50] sm:$0xff]   ;;  %v1250_v39 = vld [vmem:[#allocation8 + $0xa0] sm:$0xff]   ;;  %v1252_v40 = vld [vmem:[#allocation8 + $0xd8] sm:$0xff]  }
  0x4e   :  { %1040 = vmatmul.mubr.msk.bf16.vlgmr.msra.gmra.mxu0 %vm234_vm0, %v93_v15  ;;  %1041 = vmatmul.mubr.msk.bf16.vlgmr.msra.gmra.mxu1 %vm234_vm0, %v93_v15  ;;  %v1255_v41 = vld [vmem:[#allocation8 + $0x10] sm:$0xff]   ;;  %v1254_v42 = vld [vmem:[#allocation8 + $0x98] sm:$0xff]   ;;  %v1257_v44 = vld [vmem:[#allocation8 + $0x48] sm:$0xff]  }
  0x4f   :  { %331 = vmatpush1.bf16.msra.mxu0 %v1225_v16  ;;  %352 = vmatprep.mubr.bf16.mxu0 %v1427_v0  ;;  %v1256_v43 = vld [vmem:[#allocation8 + $0xd0] sm:$0xff]   ;;  %v1259_v46 = vld [vmem:[#allocation8 + $0x8] sm:$0xff]   ;;  %v1261_v48 = vld [vmem:[#allocation8 + $0x40] sm:$0xff]  }
  0x50   :  { %332 = vmatprep.subr.bf16.mxu0 %v1230_v17  ;;  %1100 = vmatpush3.bf16.msra.mxu1 %v1235_v20  ;;  %v1258_v45 = vld [vmem:[#allocation8 + $0x90] sm:$0xff]   ;;  %v1260_v47 = vld [vmem:[#allocation8 + $0xc8] sm:$0xff]   ;;  %v1263_v50 = vld [vmem:[#allocation8] sm:$0xff]  }
  0x51   :  { %1101 = vmatprep.subr.bf16.mxu1 %v1237_v22  ;;  %v1262_v49 = vld [vmem:[#allocation8 + $0x88] sm:$0xff]   ;;  %v1264_v51 = vld [vmem:[#allocation8 + $0xc0] sm:$0xff]   ;;  %v1266_v53 = vld [vmem:[#allocation8 + $0x178] sm:$0xff]  }
  0x52   :  { %v1265_v52 = vld [vmem:[#allocation8 + $0x80] sm:$0xff]   ;;  %v112_v57 = vld [vmem:[#allocation7] sm:$0x3f] }
  0x53   :  { %333 = vmatpush1.bf16.msra.mxu0 %v1228_v18  ;;  %v207_v60 = vrot.slane %v112_v57, %v206_v56  ;;  %v211_v62 = vrot.slane %v112_v57, %v210_v58  ;;  %v215_v63 = vrot.slane %v112_v57, %v214_v59  ;;  %v219_v2 = vrot.slane %v112_v57, %v218_v61  ;;  %v1267_v17 = vld [vmem:[#allocation8 + $0x138] sm:$0xff]   ;;  %v1288_v56 = vld [vmem:[#allocation10 + $0x8] sm:$0xff]  }
  0x54   :  { %334 = vmatprep.subr.bf16.mxu0 %v1233_v21  ;;  %1102 = vmatpush3.bf16.msra.mxu1 %v1239_v24  ;;  %v226_v18 = vsub.s32 5, %v1495_v55  ;;  %v1268_v21 = vld [vmem:[#allocation8 + $0x170] sm:$0xff]   ;;  %v1286_v54 = vld [vmem:[#allocation10 + $0x18] sm:$0xff]  }
  0x55   :  { %1103 = vmatprep.subr.bf16.mxu1 %v1241_v26  ;;  %v1269_v24 = vld [vmem:[#allocation8 + $0x130] sm:$0xff]   ;;  %v1270_v26 = vld [vmem:[#allocation8 + $0x168] sm:$0xff]  }
  0x57   :  { %335 = vmatpush1.bf16.msra.mxu0 %v1231_v23 }
  0x58   :  { %1121 = vmatprep.subr.bf16.mxu0 %v1236_v25  ;;  %1104 = vmatpush3.bf16.msra.mxu1 %v1243_v28  ;;  %v227_v25 = vrot.slane %v112_v57, %v226_v18 }
  0x59   :  { %1105 = vmatprep.subr.bf16.mxu1 %v1245_v30 }
  0x5a   :  { %1042 = vmatmul.mubr.msk.bf16.vlgmr.msra.gmra.mxu0 %vm234_vm0, %v93_v15 }
  0x5b   :  { %1122 = vmatpush3.bf16.msra.mxu0 %v1238_v27 }
  0x5c   :  { %1123 = vmatprep.subr.bf16.mxu0 %v1240_v29  ;;  %1106 = vmatpush3.bf16.msra.mxu1 %v1247_v32  ;;  %v1271_v29 = vld [vmem:[#allocation8 + $0x128] sm:$0xff]  }
  0x5d   :  { %1107 = vmatprep.subr.bf16.mxu1 %v1249_v34 }
  0x5f   :  { %1124 = vmatpush3.bf16.msra.mxu0 %v1242_v31  ;;  %v1272_v31 = vld [vmem:[#allocation8 + $0x160] sm:$0xff]  }
  0x60   :  { %1125 = vmatprep.subr.bf16.mxu0 %v1244_v33  ;;  %1108 = vmatpush3.bf16.msra.mxu1 %v1251_v36  ;;  %v1274_v36 = vld [vmem:[#allocation8 + $0x158] sm:$0xff]  }
  0x61   :  { %1109 = vmatprep.subr.bf16.mxu1 %v1253_v38  ;;  %v1275_v38 = vld [vmem:[#allocation8 + $0x118] sm:$0xff]  }
  0x63   :  { %1126 = vmatpush3.bf16.msra.mxu0 %v1246_v35  ;;  %v1273_v35 = vld [vmem:[#allocation8 + $0x120] sm:$0xff]  }
  0x64   :  { %1127 = vmatprep.subr.bf16.mxu0 %v1248_v37  ;;  %1110 = vmatpush3.bf16.msra.mxu1 %v1255_v41  ;;  %v222_v37 = vsub.s32 4, %v1495_v55  ;;  %v1277_v41 = vld [vmem:[#allocation8 + $0x110] sm:$0xff]  }
  0x65   :  { %1111 = vmatprep.subr.bf16.mxu1 %v1257_v44  ;;  %v1279_v44 = vld [vmem:[#allocation8 + $0x108] sm:$0xff]   ;;  %v1287_v55 = vld [vmem:[#allocation10 + $0x10] sm:$0xff]  }
  0x67   :  { %1128 = vmatpush3.bf16.msra.mxu0 %v1250_v39  ;;  %v1276_v39 = vld [vmem:[#allocation8 + $0x150] sm:$0xff]  }
  0x68   :  { %1129 = vmatprep.subr.bf16.mxu0 %v1252_v40  ;;  %1112 = vmatpush3.bf16.msra.mxu1 %v1259_v46  ;;  %v223_v40 = vrot.slane %v112_v57, %v222_v37  ;;  %v1289_v57 = vld [vmem:[#allocation10] sm:$0xff]  }
  0x69   :  { %1113 = vmatprep.subr.bf16.mxu1 %v1261_v48 }
  0x6b   :  { %1130 = vmatpush3.bf16.msra.mxu0 %v1254_v42  ;;  %v1278_v42 = vld [vmem:[#allocation8 + $0x148] sm:$0xff]  }
  0x6c   :  { %1131 = vmatprep.subr.bf16.mxu0 %v1256_v43  ;;  %1114 = vmatpush3.bf16.msra.mxu1 %v1263_v50  ;;  %v1428_v50 = vmov 0.0  }
  0x6d   :  { %1143 = vmatprep.subr.bf16.mxu1 %v1266_v53  ;;  %v1285_v53 = vld [vmem:[#allocation10 + $0x20] sm:$0xff]  }
  0x6f   :  { %1132 = vmatpush3.bf16.msra.mxu0 %v1258_v45  ;;  %v1280_v45 = vld [vmem:[#allocation8 + $0x140] sm:$0xff]  }
  0x70   :  { %1133 = vmatprep.subr.bf16.mxu0 %v1260_v47  ;;  %v1281_v47 = vld [vmem:[#allocation8 + $0x100] sm:$0xff]  }
  0x73   :  { %1134 = vmatpush3.bf16.msra.mxu0 %v1262_v49  ;;  %v1282_v49 = vld [vmem:[#allocation10 + $0x38] sm:$0xff]  }
  0x74   :  { %1135 = vmatprep.subr.bf16.mxu0 %v1264_v51  ;;  %v1283_v51 = vld [vmem:[#allocation10 + $0x30] sm:$0xff]  }
  0x77   :  { %1136 = vmatpush3.bf16.msra.mxu0 %v1265_v52  ;;  %v1284_v52 = vld [vmem:[#allocation10 + $0x28] sm:$0xff]  }
  0x78   :  { %1174 = vmatprep.subr.bf16.mxu0 %v1428_v50 }
 0x10e   :  { %v272_v0 = vpop.f32.mrf.mxu0  ;;  %v313_v4 = vpop.f32.mrf.mxu1 }
 0x10f   :  { %v273_v1 = vadd.f32 %v272_v0, %v207_v60  ;;  %v314_v6 = vadd.f32 %v313_v4, %v215_v63 }
 0x110   :  { %v274_v3 = vpop.f32.mrf.mxu0  ;;  %v315_v9 = vpop.f32.mrf.mxu1 }
 0x111   :  { %v275_v5 = vadd.f32 %v274_v3, %v211_v62  ;;  %v374_v7 = vmax.f32 %v273_v1, 0.0  ;;  %v376_v11 = vmax.f32 %v314_v6, 0.0  ;;  %v316_v12 = vadd.f32 %v315_v9, %v219_v2  ;;  %v488_v3 = vld [vmem:[%s1516_s4] sm:$0x1]  ;;  %s1390_s4 = scalar_lea.vmem %s1012_s8, 16 }
 0x112   :  { %v276_v8 = vpop.f32.mrf.mxu0  ;;  %v317_v14 = vpop.f32.mrf.mxu1  ;;  %p1391_p11 = scmp.ne.s32.totalorder %s1012_s8, %s1390_s4  ;;  %p1396_p13 = scmp.lt.s32.totalorder %s1394_s9, %s1390_s4 }
 0x113   :  { %v375_v10 = vmax.f32 %v275_v5, 0.0  ;;  %v377_v16 = vmax.f32 %v316_v12, 0.0  ;;  %v386_v19 = vpack.c.bf16 %v374_v7, %v374_v7  ;;  %v388_v20 = vpack.c.bf16 %v376_v11, %v376_v11 }
 0x114   :  { %v277_v13 = vpop.f32.mrf.mxu0  ;;  %v318_v22 = vpop.f32.mrf.mxu1  ;;  %p1397_p0 = por %p1396_p13, %p1395_p12 }
 0x115   :  { %v387_v15 = vpack.c.bf16 %v375_v10, %v375_v10  ;;  %v389_v23 = vpack.c.bf16 %v377_v16, %v377_v16 }
 0x116   :  { %p1398_p1 = pnand %p1397_p0, %p1391_p11 }
 0x117   :  { %809 = vmatprep.mubr.bf16.mxu1 %v387_v15  ;;  %849 = vmatprep.mubr.bf16.mxu0 %v389_v23  ;;  %v915_v15 = vld [vmem:[%s1518_s6] sm:$0x1] }
 0x118   :  { %810 = vmatmul.mubr.bf16.vlgmr.msra.gmra.mxu1 %v386_v19  ;;  %850 = vmatmul.mubr.bf16.vlgmr.msra.gmra.mxu0 %v388_v20 }
 0x119   :  { %1144 = vmatpush3.bf16.msra.mxu1 %v1267_v17  ;;  %1175 = vmatpush3.bf16.msra.mxu0 %v1282_v49 }
 0x11a   :  { %1145 = vmatprep.subr.bf16.mxu1 %v1268_v21  ;;  %v354_v27 = vpop.f32.mrf.mxu0  ;;  %1176 = vmatprep.subr.bf16.mxu0 %v1428_v50 }
 0x11b   :  { %v355_v43 = vadd.f32 %v354_v27, %v223_v40  ;;  %1190 = vmatprep.mubr.msk.bf16.mxu0 %vm1429_vm1, %v1428_v50 }
 0x11c   :  { %v356_v28 = vpop.f32.mrf.mxu0 }
 0x11d   :  { %1146 = vmatpush3.bf16.msra.mxu1 %v1269_v24  ;;  %v357_v30 = vadd.f32 %v356_v28, %v227_v25  ;;  %v378_v46 = vmax.f32 %v355_v43, 0.0  ;;  %1177 = vmatpush3.bf16.msra.mxu0 %v1283_v51 }
 0x11e   :  { %1147 = vmatprep.subr.bf16.mxu1 %v1270_v26  ;;  %v358_v32 = vpop.f32.mrf.mxu0  ;;  %1178 = vmatprep.subr.bf16.mxu0 %v1428_v50 }
 0x11f   :  { %v391_v33 = vpack.c.bf16 %v357_v30, %v357_v30  ;;  %v390_v48 = vpack.c.bf16 %v378_v46, %v378_v46 }
 0x120   :  { %v359_v34 = vpop.f32.mrf.mxu0 }
 0x121   :  { %1148 = vmatpush3.bf16.msra.mxu1 %v1271_v29  ;;  %889 = vmatprep.mubr.bf16.mxu1 %v391_v33 }
 0x122   :  { %1149 = vmatprep.subr.bf16.mxu1 %v1272_v31  ;;  %1179 = vmatpush3.bf16.msra.mxu0 %v1284_v52 }
 0x123   :  { %1180 = vmatprep.subr.bf16.mxu0 %v1428_v50 }
 0x125   :  { %1150 = vmatpush3.bf16.msra.mxu1 %v1273_v35 }
 0x126   :  { %1151 = vmatprep.subr.bf16.mxu1 %v1274_v36  ;;  %1181 = vmatpush3.bf16.msra.mxu0 %v1285_v53 }
 0x127   :  { %1182 = vmatprep.subr.bf16.mxu0 %v1428_v50 }
 0x129   :  { %1152 = vmatpush3.bf16.msra.mxu1 %v1275_v38 }
 0x12a   :  { %1153 = vmatprep.subr.bf16.mxu1 %v1276_v39  ;;  %1183 = vmatpush3.bf16.msra.mxu0 %v1286_v54 }
 0x12b   :  { %1184 = vmatprep.subr.bf16.mxu0 %v1428_v50 }
 0x12d   :  { %1154 = vmatpush3.bf16.msra.mxu1 %v1277_v41 }
 0x12e   :  { %1155 = vmatprep.subr.bf16.mxu1 %v1278_v42  ;;  %1185 = vmatpush3.bf16.msra.mxu0 %v1287_v55 }
 0x12f   :  { %1186 = vmatprep.subr.bf16.mxu0 %v1428_v50 }
 0x131   :  { %1156 = vmatpush3.bf16.msra.mxu1 %v1279_v44 }
 0x132   :  { %1157 = vmatprep.subr.bf16.mxu1 %v1280_v45  ;;  %1187 = vmatpush3.bf16.msra.mxu0 %v1288_v56 }
 0x133   :  { %1188 = vmatprep.subr.bf16.mxu0 %v1428_v50 }
 0x135   :  { %1158 = vmatpush3.bf16.msra.mxu1 %v1281_v47 }
 0x136   :  { %1189 = vmatpush3.bf16.msra.mxu0 %v1289_v57 }
 0x138   :  { %890 = vmatmul.mubr.bf16.vlgmr.msra.gmra.mxu1 %v390_v48 }
 0x1d8   :  { %v1115_v58 = vpop.f32.mrf.mxu1  ;;  %v1137_v60 = vpop.f32.mrf.mxu0 }
 0x1da   :  { %v1116_v59 = vpop.f32.mrf.mxu1  ;;  %v1138_v62 = vpop.f32.mrf.mxu0 }
 0x1db   :  { %v1117_v2 = vadd.f32 %v1116_v59, %v1115_v58  ;;  %v1139_v5 = vadd.f32 %v1138_v62, %v1137_v60 }
 0x1dc   :  { %v1118_v61 = vpop.f32.mrf.mxu1  ;;  %v1140_v0 = vpop.f32.mrf.mxu0 }
 0x1dd   :  { %v812_v4 = vadd.f32 %v1117_v2, %v488_v3 }
 0x1de   :  { %v1119_v63 = vpop.f32.mrf.mxu1  ;;  %v1141_v1 = vpop.f32.mrf.mxu0 }
 0x1df   :  { %v852_v8 = vadd.f32 %v1139_v5, %v812_v4 }
 0x1f8   :  { %v1159_v6 = vpop.f32.mrf.mxu1 }
 0x1fa   :  { %v1160_v7 = vpop.f32.mrf.mxu1 }
 0x1fb   :  { %v1161_v9 = vadd.f32 %v1160_v7, %v1159_v6 }
 0x1fc   :  { %v1162_v10 = vpop.f32.mrf.mxu1 }
 0x1fd   :  { %v892_v11 = vadd.f32 %v1161_v9, %v852_v8 }
 0x1fe   :  { %v1163_v12 = vpop.f32.mrf.mxu1 }
 0x1ff   :  { %v897_v13 = vmax.f32 %v892_v11, 0.0 }
 0x201   :  { %v898_v14 = vpack.c.bf16 %v897_v13, %v897_v13 }
 0x203   :  { %1191 = vmatmul.mubr.bf16.vlgmr.msra.gmra.mxu0 %v898_v14 }
 0x2c3   :  { %v998_v16 = vpop.f32.mrf.mxu0 }
 0x2c4   :  { %v999_v17 = vadd.f32 %v998_v16, %v915_v15 }
 0x2c5   :  { %v1192_v18 = vpop.f32.mrf.mxu0 }
 0x2c6   :  { %1004 = vst [vmem:[#allocation11] sm:$0x1] %v999_v17 }
 0x2c7   :  { %v1001_v19 = vpop.f32.mrf.mxu0 }
 0x2c8   :  { %1401 = shalt.err (!%p1398_p1)
}
 0x2c9   :  { %1014 = dma.vmem_to_hbm [thread:$0]  %s1012_s8, 16, %s1519_s7, [#allocation4]   ;;  %v1193_v20 = vpop.f32.mrf.mxu0 }
 0x2ca   :  { %1416 = dma.done.wait [#allocation4], 16  }
 0x2cb   :  { %1417 = vsyncadd [#allocation4], 4294967280 }
 0x2cc   :  { %1018 = vsyncpa [#allocation3], 1 }
 0x2cd   :  { %1019 = vsyncpa [#allocation6], 1 }
 0x2ce   :  { %1020 = vsyncpa [#allocation9], 1 }
 0x2cf   :  { %1021 = vsyncpa [#allocation4], 1 }

</bundles_post_ra>
